<compile_context>
chip_gen: v7x
topology: tpu7x:2x2x1
jax: 0.10.0
libtpu: 0.0.40
codegen_flags: <defaults>
</compile_context>

<pallas_src>
import functools
import math

import jax
import jax.numpy as jnp
from jax import lax
from jax.experimental import pallas as pl
from jax.experimental.pallas import tpu as pltpu


def _layernorm2d_kernel(x_ref, g_ref, b_ref, p_ref, o_ref, *, eps, inv_n):
    # x_ref: (C, n_blk, L)  with L = tu*F ; lane j inside a sub-tile belongs
    #        to time position j // F.
    # g_ref, b_ref: (C, L)  f32 affine params, already tiled across tu.
    # p_ref: (L, L) f32 block-diagonal ones: P[i, j] = 1 iff i//F == j//F.
    x = x_ref[...].astype(jnp.float32)                    # (C, n_blk, L)
    p = p_ref[...]                                        # (L, L)

    # sum over channels, then grouped-sum + broadcast over each position's F
    # lanes via one MXU matmul (rows are independent -> no cross-position mix).
    sc = jnp.sum(x, axis=0)                               # (n_blk, L)
    mean = jnp.dot(sc, p,
                   precision=lax.Precision.HIGHEST,
                   preferred_element_type=jnp.float32) * inv_n   # (n_blk, L)

    xc = x - mean[None, :, :]                             # centered
    sq = jnp.sum(xc * xc, axis=0)                         # (n_blk, L)
    var = jnp.dot(sq, p,
                  precision=lax.Precision.HIGHEST,
                  preferred_element_type=jnp.float32) * inv_n    # biased var

    inv = lax.rsqrt(var + eps)                            # (n_blk, L)
    y = xc * inv[None, :, :] * g_ref[...][:, None, :] + b_ref[...][:, None, :]
    o_ref[...] = y.astype(o_ref.dtype)


def layernorm2d(xs, gamma, beta, *, eps=1e-12, target_block_bytes=1 << 20):
    """xs: [B, C, T, F]; gamma, beta: [C, F]. Returns [B, C, T, F]."""
    B, C, T, F = xs.shape
    n = C * F

    # Fold tu time steps into the lane axis so the last dim is a multiple of
    # 128 (lane-dense loads/stores). This reshape is contiguous -> no HBM copy.
    tu = 128 // math.gcd(F, 128)          # smallest tu with (tu*F) % 128 == 0
    L = tu * F                            # == lcm(F, 128)
    if L > 1024:                          # pathological F: keep correctness,
        tu, L = 1, F                      # give up on lane padding-free layout
    # TODO(synk): for very large F (> 1024) the (L, L) grouping matrix gets big;
    # such shapes would want a direct lane-segment reduction instead.

    T_pad = ((T + tu - 1) // tu) * tu     # not hit in the demo
    xs_in = xs if T_pad == T else jnp.pad(xs, ((0, 0), (0, 0), (0, T_pad - T), (0, 0)))
    n_sub = T_pad // tu
    x3 = xs_in.reshape(B, C, n_sub, L)    # free reshape, native layout kept

    # Affine params: cast to f32 once, tile across the folded time steps.
    g2 = jnp.tile(gamma.astype(jnp.float32).reshape(C, F), (1, tu))   # (C, L)
    b2 = jnp.tile(beta.astype(jnp.float32).reshape(C, F), (1, tu))    # (C, L)

    # Block-diagonal grouping matrix (sum over each position's F lanes and
    # broadcast back in one matmul).
    pos = jnp.arange(L, dtype=jnp.int32) // F
    P = (pos[:, None] == pos[None, :]).astype(jnp.float32)            # (L, L)

    # Pick the biggest T-tile that keeps the double-buffered footprint modest.
    itemsize = xs.dtype.itemsize
    sub_mult = max(8, 32 // itemsize)     # 8 for f32, 16 for bf16 sublane packing
    cap = max(1, target_block_bytes // (C * L * itemsize))
    if n_sub <= cap or n_sub <= sub_mult:
        n_blk = n_sub                     # full extent is always a legal block
    else:
        n_blk = min((n_sub // sub_mult) * sub_mult,
                    max(sub_mult, (cap // sub_mult) * sub_mult))

    grid = (B, pl.cdiv(n_sub, n_blk))

    out3 = pl.pallas_call(
        functools.partial(_layernorm2d_kernel, eps=eps, inv_n=1.0 / n),
        out_shape=jax.ShapeDtypeStruct((B, C, n_sub, L), xs.dtype),
        grid_spec=pltpu.PrefetchScalarGridSpec(
            num_scalar_prefetch=0,
            grid=grid,
            in_specs=[
                pl.BlockSpec((None, C, n_blk, L), lambda b, s: (b, 0, s, 0)),
                pl.BlockSpec((C, L), lambda b, s: (0, 0)),
                pl.BlockSpec((C, L), lambda b, s: (0, 0)),
                pl.BlockSpec((L, L), lambda b, s: (0, 0)),
            ],
            out_specs=pl.BlockSpec((None, C, n_blk, L), lambda b, s: (b, 0, s, 0)),
        ),
        compiler_params=pltpu.CompilerParams(
            dimension_semantics=("parallel", "parallel"),
            vmem_limit_bytes=32 * 1024 * 1024,
        ),
    )(x3, g2, b2, P)

    out = out3.reshape(B, C, T_pad, F)
    if T_pad != T:
        out = out[:, :, :T, :]
    return out


def _reference(xs, gamma, beta, eps=1e-12):
    # pure-JAX mirror of the PyTorch forward
    x = jnp.transpose(xs, (0, 2, 1, 3)).astype(jnp.float32)   # [B, T, C, F]
    mean = jnp.mean(x, axis=(-2, -1), keepdims=True)
    var = jnp.mean((x - mean) ** 2, axis=(-2, -1), keepdims=True)
    y = (x - mean) / jnp.sqrt(var + eps) * gamma + beta
    return jnp.transpose(y, (0, 2, 1, 3)).astype(xs.dtype)


if __name__ == "__main__":
    B, C, T, F = 2, 4, 16, 16
    eps = 1e-12

    key = jax.random.PRNGKey(0)
    kx, kg, kb = jax.random.split(key, 3)
    xs = jax.random.normal(kx, (B, C, T, F), dtype=jnp.float32)
    # nn.LayerNorm([C, F]) params: weight init ones, bias zeros; perturb
    # deterministically so the affine part is exercised.
    gamma = jnp.ones((C, F), jnp.float32) + 0.1 * jax.random.normal(kg, (C, F), jnp.float32)
    beta = 0.1 * jax.random.normal(kb, (C, F), jnp.float32)

    out = layernorm2d(xs, gamma, beta, eps=eps)
    out = jax.block_until_ready(out)

    ref = _reference(xs, gamma, beta, eps=eps)
    assert out.shape == (B, C, T, F)
    assert jnp.allclose(out, ref, atol=1e-5, rtol=1e-5)

    print("KERNEL_OK")
</pallas_src>

<mosaic_0001>
module attributes {stable_mosaic.version = 11 : i64} {
  func.func @_layernorm2d_kernel(%arg0: i32, %arg1: i32, %arg2: memref<1x4x2x128xf32, #tpu.memory_space<vmem>>, %arg3: memref<4x128xf32, #tpu.memory_space<vmem>>, %arg4: memref<4x128xf32, #tpu.memory_space<vmem>>, %arg5: memref<128x128xf32, #tpu.memory_space<vmem>>, %arg6: memref<1x4x2x128xf32, #tpu.memory_space<vmem>>) attributes {dimension_semantics = [#tpu.dimension_semantics<parallel>, #tpu.dimension_semantics<parallel>], iteration_bounds = array<i64: 2, 1>, scalar_prefetch = 0 : i64, scratch_operands = 0 : i64, tpu.core_type = #tpu.core_type<tc>, window_params = [{transform_indices = @transform_0, window_bounds = array<i64: 1, 4, 2, 128>}, {pipeline_mode = #tpu.pipeline_mode<synchronous>, transform_indices = @transform_1, window_bounds = array<i64: 4, 128>}, {pipeline_mode = #tpu.pipeline_mode<synchronous>, transform_indices = @transform_2, window_bounds = array<i64: 4, 128>}, {pipeline_mode = #tpu.pipeline_mode<synchronous>, transform_indices = @transform_3, window_bounds = array<i64: 128, 128>}, {transform_indices = @transform_4, window_bounds = array<i64: 1, 4, 2, 128>}]} {
    %c0 = arith.constant 0 : index
    %c0_0 = arith.constant 0 : index
    %c0_1 = arith.constant 0 : index
    %c0_2 = arith.constant 0 : index
    %0 = vector.load %arg2[%c0, %c0_0, %c0_1, %c0_2] : memref<1x4x2x128xf32, #tpu.memory_space<vmem>>, vector<1x4x2x128xf32>
    %1 = vector.shape_cast %0 : vector<1x4x2x128xf32> to vector<4x2x128xf32>
    %c0_3 = arith.constant 0 : index
    %c0_4 = arith.constant 0 : index
    %2 = vector.load %arg5[%c0_3, %c0_4] : memref<128x128xf32, #tpu.memory_space<vmem>>, vector<128x128xf32>
    %cst = arith.constant dense<0.000000e+00> : vector<2x128xf32>
    %3 = vector.multi_reduction <add>, %1, %cst [0] : vector<4x2x128xf32> to vector<2x128xf32>
    %cst_5 = arith.constant dense<0.000000e+00> : vector<2x128xf32>
    %4 = tpu.matmul %3, %2, %cst_5 {dimension_numbers = #tpu.dot_dimension_numbers<[1], [0], [0], [1], [0, 0, 1, 1], [], []>, precision = #tpu.contract_precision<fp32>} : vector<2x128xf32>, vector<128x128xf32>, vector<2x128xf32> -> vector<2x128xf32>
    %cst_6 = arith.constant 1.562500e-02 : f32
    %5 = vector.broadcast %cst_6 : f32 to vector<2x128xf32>
    %6 = arith.mulf %4, %5 : vector<2x128xf32>
    %7 = vector.shape_cast %6 : vector<2x128xf32> to vector<1x2x128xf32>
    %8 = vector.broadcast %7 : vector<1x2x128xf32> to vector<4x2x128xf32>
    %9 = arith.subf %1, %8 : vector<4x2x128xf32>
    %10 = arith.mulf %9, %9 : vector<4x2x128xf32>
    %cst_7 = arith.constant dense<0.000000e+00> : vector<2x128xf32>
    %11 = vector.multi_reduction <add>, %10, %cst_7 [0] : vector<4x2x128xf32> to vector<2x128xf32>
    %cst_8 = arith.constant dense<0.000000e+00> : vector<2x128xf32>
    %12 = tpu.matmul %11, %2, %cst_8 {dimension_numbers = #tpu.dot_dimension_numbers<[1], [0], [0], [1], [0, 0, 1, 1], [], []>, precision = #tpu.contract_precision<fp32>} : vector<2x128xf32>, vector<128x128xf32>, vector<2x128xf32> -> vector<2x128xf32>
    %cst_9 = arith.constant 1.562500e-02 : f32
    %13 = vector.broadcast %cst_9 : f32 to vector<2x128xf32>
    %14 = arith.mulf %12, %13 : vector<2x128xf32>
    %cst_10 = arith.constant 9.99999996E-13 : f32
    %15 = vector.broadcast %cst_10 : f32 to vector<2x128xf32>
    %16 = arith.addf %14, %15 : vector<2x128xf32>
    %17 = math.rsqrt %16 : vector<2x128xf32>
    %18 = vector.shape_cast %17 : vector<2x128xf32> to vector<1x2x128xf32>
    %19 = vector.broadcast %18 : vector<1x2x128xf32> to vector<4x2x128xf32>
    %20 = arith.mulf %9, %19 : vector<4x2x128xf32>
    %c0_11 = arith.constant 0 : index
    %c0_12 = arith.constant 0 : index
    %21 = vector.load %arg3[%c0_11, %c0_12] : memref<4x128xf32, #tpu.memory_space<vmem>>, vector<4x128xf32>
    %22 = vector.shape_cast %21 : vector<4x128xf32> to vector<4x1x128xf32>
    %23 = vector.broadcast %22 : vector<4x1x128xf32> to vector<4x2x128xf32>
    %24 = arith.mulf %20, %23 : vector<4x2x128xf32>
    %c0_13 = arith.constant 0 : index
    %c0_14 = arith.constant 0 : index
    %25 = vector.load %arg4[%c0_13, %c0_14] : memref<4x128xf32, #tpu.memory_space<vmem>>, vector<4x128xf32>
    %26 = vector.shape_cast %25 : vector<4x128xf32> to vector<4x1x128xf32>
    %27 = vector.broadcast %26 : vector<4x1x128xf32> to vector<4x2x128xf32>
    %28 = arith.addf %24, %27 : vector<4x2x128xf32>
    %c0_15 = arith.constant 0 : index
    %c0_16 = arith.constant 0 : index
    %c0_17 = arith.constant 0 : index
    %c0_18 = arith.constant 0 : index
    %29 = vector.load %arg6[%c0_15, %c0_16, %c0_17, %c0_18] : memref<1x4x2x128xf32, #tpu.memory_space<vmem>>, vector<1x4x2x128xf32>
    %30 = vector.shape_cast %29 : vector<1x4x2x128xf32> to vector<4x2x128xf32>
    %31 = vector.shape_cast %28 : vector<4x2x128xf32> to vector<1x4x2x128xf32>
    tpu.vector_store %arg6[%c0_15, %c0_16, %c0_17, %c0_18], %31 {strides = array<i32>} : memref<1x4x2x128xf32, #tpu.memory_space<vmem>>, vector<1x4x2x128xf32>,
    return
  }
  func.func @transform_0(%arg0: i32, %arg1: i32) -> (i32, i32, i32, i32) {
    %c0_i32 = arith.constant 0 : i32
    %c0_i32_0 = arith.constant 0 : i32
    %c0_i32_1 = arith.constant 0 : i32
    return %arg0, %c0_i32, %arg1, %c0_i32_0 : i32, i32, i32, i32
  }
  func.func @transform_1(%arg0: i32, %arg1: i32) -> (i32, i32) {
    %c0_i32 = arith.constant 0 : i32
    %c0_i32_0 = arith.constant 0 : i32
    %c0_i32_1 = arith.constant 0 : i32
    return %c0_i32, %c0_i32_0 : i32, i32
  }
  func.func @transform_2(%arg0: i32, %arg1: i32) -> (i32, i32) {
    %c0_i32 = arith.constant 0 : i32
    %c0_i32_0 = arith.constant 0 : i32
    %c0_i32_1 = arith.constant 0 : i32
    return %c0_i32, %c0_i32_0 : i32, i32
  }
  func.func @transform_3(%arg0: i32, %arg1: i32) -> (i32, i32) {
    %c0_i32 = arith.constant 0 : i32
    %c0_i32_0 = arith.constant 0 : i32
    %c0_i32_1 = arith.constant 0 : i32
    return %c0_i32, %c0_i32_0 : i32, i32
  }
  func.func @transform_4(%arg0: i32, %arg1: i32) -> (i32, i32, i32, i32) {
    %c0_i32 = arith.constant 0 : i32
    %c0_i32_0 = arith.constant 0 : i32
    %c0_i32_1 = arith.constant 0 : i32
    return %arg0, %c0_i32, %arg1, %c0_i32_0 : i32, i32, i32, i32
  }
}

</mosaic_0001>

<bundles_post_ra>
// kernel: tpu_custom_call.1
= control target key start
LH: loop header
LB: loop body
LE: loop exit
PB: predicated region body
PF: predicated region fallthrough
CT: control target
= control target key end

     0   :  { %9 = vsyncpa [#allocation3], 0  ;;  %s3799_s0 = inlined_call_operand.hbm [shape: f32[2,4,2,128], index: 0, kind: input, shape index: {}]   ;;  %s3800_s1 = inlined_call_operand.hbm [shape: f32[4,128], index: 1, kind: input, shape index: {}]   ;;  %s3801_s2 = inlined_call_operand.vmem [shape: f32[4,128], index: 2, kind: input, shape index: {}]   ;;  %s3802_s3 = inlined_call_operand.hbm [shape: f32[128,128], index: 3, kind: input, shape index: {}]   ;;  %s3803_s4 = inlined_call_operand.hbm [shape: f32[2,4,2,128], index: 4, kind: output, shape index: {}]  }
   0x1   :  { %11 = vsyncpa [#allocation3 + $0x1], 0 }
   0x2   :  { %12 = vsyncpa [#allocation6], 0 }
   0x3   :  { %13 = vsyncpa [#allocation4], 0 }
   0x4   :  { %15 = vsyncpa [#allocation4 + $0x1], 0  ;;  %s3079_s15 = smov 0   ;;  %s3081_s16 = smov 0  }
   0x5   :  { %s3083_s17 = smov 0   ;;  %s3085_s18 = smov 0  }
   0x6   :  { %s3087_s19 = smov 0   ;;  %s3089_s20 = smov 0  }
   0x7 LB: > { %s1816_s21 = sadd.s32 4294967295, %s3038_s20   ;;  %s1817_s22 = sadd.s32 4294967294, %s3038_s20   ;;  %s3038_s20 = sphi %s3089_s20, %s21_s20   ;;  %s3034_s19 = sphi %s3087_s19, %s3833_s19   ;;  %s3030_s18 = sphi %s3085_s18, %s3832_s18   ;;  %s3026_s17 = sphi %s3083_s17, %s3831_s17   ;;  %s3022_s16 = sphi %s3081_s16, %s3830_s16   ;;  %s3018_s15 = sphi %s3079_s15, %s3829_s15  }
   0x8   : > { %p49_p0 = scmp.ne.s32.totalorder %s3026_s17, %s3022_s16  ;;  %p50_p1 = scmp.eq.s32.totalorder %s3038_s20, 0 }
   0x9   : > { %p55_p2 = scmp.ne.s32.totalorder %s3022_s16, %s3018_s15  ;;  %p3117_p3 = scmp.eq.s32.totalorder %s1816_s21, 0 }
   0xa   : > { %p144_p4 = scmp.eq.s32.totalorder %s1816_s21, 1  ;;  %p3121_p5 = por %p50_p1, %p49_p0 }
   0xb   : > { %s3811_s24 = scalar_select %p3117_p3, 1, 0 }
   0xc   : > { %p150_p6 = scmp.eq.s32.totalorder %s1817_s22, 1  ;;  %p3127_p7 = por %p3117_p3, %p55_p2 }
   0xd   : > { %p3131_p8 = por %p144_p4, %p49_p0  ;;  %p1818_p10 = scmp.ge.s32.totalorder %s3038_s20, 1 }
   0xe   : > { %s3813_s26 = scalar_select %p3127_p7, 1, 0 }
   0xf   : > { %s3814_s27 = scalar_select %p3131_p8, 1, 0 }
  0x10   : > { %p3135_p9 = por %p150_p6, %p55_p2  ;;  %p157_p11 = scmp.lt.s32.totalorder %s3038_s20, 3 }
  0x11   : > { %s3040_s30 = smov [#allocation5]   ;;  %p2800_p1 = scmp.lt.s32.totalorder %s3038_s20, 2 }
  0x12   : > { %s3815_s28 = scalar_select %p3135_p9, 1, 0 }
  0x13   : > { %p3142_p13 = pnand %p1818_p10, %p157_p11  ;;  %s170_s5 = sshll.u32 %s3040_s30, 4  ;;  %s171_s5 = int_to_ptr.vmem [resolvable:$true] %s170_s5 }
  0x14   : > { %p3151_p4 = pnand %p2800_p1, %p3121_p5  ;;  %s3041_s7 = smov [#allocation7]  }
  0x15   : > { %s3816_s29 = scalar_select %p3142_p13, 1, 0 }
  0x16   : > { %p2783_p0 = pneg %p3142_p13  ;;  %s183_s8 = sshll.u32 %s3041_s7, 4  ;;  %s3161_s8 = int_to_ptr.vmem [resolvable:$true] %s183_s8 }
  0x17   : > { %s3817_s6 = scalar_select %p3151_p4, 1, 0 }
  0x18   : > { %p3157_p2 = pnand %p2783_p0, %p3117_p3  ;;  %s2866_s12 = scalar_lea.hbm %s3800_s1, 64 }
  0x19   : > { %p2867_p5 = scmp.ne.s32.totalorder %s3800_s1, %s2866_s12  ;;  %p2873_p1 = scmp.lt.u32.totalorder %s2866_s12, %s3800_s1 }
  0x1a   : > { %p2868_p6 = pneg %p3157_p2 }
  0x1c   : > { %p2869_p10 = pnand %p2868_p6, %p2867_p5 }
  0x1e   : > { %p2870_p11 = pneg %p2869_p10 }
  0x20   : > { %p2875_p0 = pnand %p2873_p1, %p2870_p11 }
  0x22   : > { %2878 = shalt.err (!%p2875_p0)
}
  0x23   : > { %s2879_s25 = scalar_lea.vmem %s171_s5, 64  ;;  %p2887_p3 = scmp.lt.s32.totalorder %s171_s5, %s171_s5 }
  0x24   : > { %p2880_p12 = scmp.ne.s32.totalorder %s171_s5, %s2879_s25  ;;  %p2888_p7 = scmp.lt.s32.totalorder %s2879_s25, %s2879_s25 }
  0x26   : > { %p2882_p9 = pnand %p2880_p12, %p2868_p6  ;;  %p2889_p13 = por %p2888_p7, %p2887_p3 }
  0x28   : > { %p2883_p8 = pneg %p2882_p9 }
  0x2a   : > { %p2890_p4 = pnand %p2889_p13, %p2883_p8 }
  0x2c   : > { %2893 = shalt.err (!%p2890_p4)
}
  0x2d   : > { %2786 = dma.hbm_to_vmem [thread:$0]  (!%p3157_p2), %s3800_s1, 64, %s171_s5, [#allocation6]  }
  0x2e   : > { %s2894_s12 = scalar_lea.hbm %s3802_s3, 2048 }
  0x2f   : > { %p2895_p9 = scmp.ne.s32.totalorder %s3802_s3, %s2894_s12  ;;  %p2901_p8 = scmp.lt.u32.totalorder %s2894_s12, %s3802_s3 }
  0x31   : > { %p2897_p3 = pnand %p2895_p9, %p2868_p6 }
  0x33   : > { %p2898_p7 = pneg %p2897_p3 }
  0x35   : > { %p2903_p12 = pnand %p2901_p8, %p2898_p7 }
  0x37   : > { %2906 = shalt.err (!%p2903_p12)
}
  0x38   : > { %s2907_s5 = scalar_lea.vmem %s3161_s8, 2048  ;;  %p2915_p10 = scmp.lt.s32.totalorder %s3161_s8, %s3161_s8 }
  0x39   : > { %p2908_p13 = scmp.ne.s32.totalorder %s3161_s8, %s2907_s5  ;;  %p2916_p11 = scmp.lt.s32.totalorder %s2907_s5, %s2907_s5 }
  0x3b   : > { %p2910_p4 = pnand %p2908_p13, %p2868_p6  ;;  %p2917_p1 = por %p2916_p11, %p2915_p10 }
  0x3d   : > { %p2911_p5 = pneg %p2910_p4 }
  0x3f   : > { %p2918_p0 = pnand %p2917_p1, %p2911_p5 }
  0x41   : > { %2921 = shalt.err (!%p2918_p0)
}
  0x42   : > { %s3042_s25 = smov 128   ;;  %s3043_s30 = smov 8  }
  0x43   : > { %2789 = dma.hbm_to_vmem [thread:$0]  (!%p3157_p2), %s3802_s3, 2048, %s3161_s8, [#allocation6], %s3042_s25, %s3042_s25, %s3043_s30  }
  0x44   : > { %s197_s11 = sand.u32 1, %s3026_s17   ;;  %s33_s12 = sadd.s32 1, %s3034_s19 }
  0x45   : > { %s1822_s13 = sshll.u32 %s197_s11, 3  ;;  %p35_p6 = scmp.ge.s32.totalorder %s33_s12, 2 }
  0x46   : > { %s1837_s14 = sshll.u32 %s3034_s19, 7  ;;  %s201_s21 = scalar_lea.vmem [#allocation2], %s1822_s13 }
  0x47   : > { %s209_s22 = sshll.u32 %s201_s21, 4  ;;  %s3835_s12 = smov (%p35_p6, %s33_s12), 0  ;;  %s3220_s22 = int_to_ptr.vmem [resolvable:$true] %s209_s22 }
  0x48   : > { %s3218_s9 = scalar_lea.hbm %s3799_s0, %s1837_s14  ;;  %s37_s8 = ssub.s32 %s3034_s19, %s3835_s12 }
  0x49   : > { %p3224_p2 = scmp.eq.s32.totalorder %s37_s8, 0  ;;  %s3228_s30 = scalar_lea.sflag [#allocation3], %s197_s11 }
  0x4a   : > { %s2922_s7 = scalar_lea.hbm %s3218_s9, 128  ;;  %p3820_p3 = scmp.ne.s32.totalorder %s3817_s6, 0 }
  0x4b   : > { %p2923_p9 = scmp.ne.s32.totalorder %s3218_s9, %s2922_s7  ;;  %s2927_s13 = scalar_lea.hbm %s3799_s0, 256 }
  0x4c   : > { %p2924_p7 = pneg %p3820_p3  ;;  %p2928_p13 = scmp.lt.u32.totalorder %s3218_s9, %s3799_s0 }
  0x4d   : > { %p2929_p4 = scmp.lt.u32.totalorder %s2927_s13, %s2922_s7  ;;  %p2931_p10 = scmp.lt.u32.totalorder %s2922_s7, %s3218_s9 }
  0x4e   : > { %p2925_p8 = pnand %p2924_p7, %p2923_p9 }
  0x4f   : > { %p2930_p5 = por %p2929_p4, %p2928_p13 }
  0x50   : > { %p2926_p12 = pneg %p2925_p8 }
  0x51   : > { %p2932_p11 = por %p2931_p10, %p2930_p5 }
  0x53   : > { %p2933_p1 = pnand %p2932_p11, %p2926_p12 }
  0x55   : > { %2936 = shalt.err (!%p2933_p1)
}
  0x56   : > { %s2937_s11 = scalar_lea.vmem %s3220_s22, 128  ;;  %s3044_s5 = smov [#allocation2]  }
  0x57   : > { %p2938_p0 = scmp.ne.s32.totalorder %s3220_s22, %s2937_s11  ;;  %s2942_s8 = sshll.u32 %s3044_s5, 4  ;;  %s2943_s8 = int_to_ptr.vmem [resolvable:$false] %s2942_s8 }
  0x58   : > { %s2944_s23 = scalar_lea.vmem %s2943_s8, 256  ;;  %p2945_p8 = scmp.lt.s32.totalorder %s3220_s22, %s2943_s8 }
  0x59   : > { %p2940_p6 = pnand %p2938_p0, %p2924_p7  ;;  %p2946_p13 = scmp.lt.s32.totalorder %s2944_s23, %s2937_s11 }
  0x5b   : > { %p2941_p9 = pneg %p2940_p6  ;;  %p2947_p4 = por %p2946_p13, %p2945_p8 }
  0x5d   : > { %p2948_p5 = pnand %p2947_p4, %p2941_p9 }
  0x5f   : > { %2951 = shalt.err (!%p2948_p5)
}
  0x60   : > { %s3045_s7 = smov 32   ;;  %s3046_s10 = smov 2  }
  0x61   : > { %2793 = dma.hbm_to_vmem [thread:$0]  (!%p3820_p3), %s3218_s9, 128, %s3220_s22, %s3228_s30, %s3045_s7, %s3045_s7, %s3046_s10  }
  0x62   : > { %s3821_s13 = sadd.s32 1, %s3026_s17  ;;  %p3822_p7 = scmp.ne.s32.totalorder %s3816_s29, 0 }
  0x63   : > { %s3261_s14 = scalar_select %p3224_p2, %s3026_s17, %s3821_s13  }
  0x64   : > { %221 = sbr.rel (%p3822_p7) target bundleno = 952 (0x3b8), region = 36  ;;  %s3266_s21 = sand.u32 (!%p3822_p7), 1, %s3022_s16  }
  0x65   : > { %s1826_s11 = sshll.u32 (!%p3822_p7), %s3266_s21, 3  ;;  %s224_s5 = scalar_lea.sflag (!%p3822_p7), [#allocation3], %s3266_s21 }
  0x66   : > { %s3272_s8 = scalar_lea.vmem (!%p3822_p7), [#allocation2], %s1826_s11  ;;  %p3823_p3 = scmp.ne.s32.totalorder (!%p3822_p7), %s3813_s26, 0 }
  0x6b   : > { %3005 = dma.done.wait (%p3823_p3), %s224_s5, 128  }
  0x6c   : > { %3007 = vsyncadd (%p3823_p3), %s224_s5, 4294967168  ;;  %p3824_p2 = scmp.ne.s32.totalorder %s3811_s24, 0 }
  0x6e   : > { %3009 = dma.done.wait (%p3824_p2), [#allocation6], 2112  }
  0x6f   : > { %3011 = vsyncadd (%p3824_p2), [#allocation6], 4294965184  ;;  %v3047_v0 = vmov 0.0|0.0   ;;  %vm3048_vm0 = vmmov 0   ;;  %v3049_v1 = vmov 0.0   ;;  %v264_v2 = vld [vmem:[#allocation7] sm:$0xff] }
  0x70   : > { %2463 = vmatprep.subr.bf16.mxu0 %v3047_v0  ;;  %2075 = vmatprep.mubr.msk.f32.mxu0 %vm3048_vm0, %v3049_v1  ;;  %v265_v3 = vld [vmem:[#allocation7 + $0x8] sm:$0xff]  ;;  %v3288_v4 = vld [vmem:[#allocation7 + $0x10] sm:$0xff]  ;;  %v289_v5 = vand.u32 4294901760, %v264_v2  ;;  %v3290_v7 = vld [vmem:[#allocation7 + $0x18] sm:$0xff]  ;;  %vm280_vm1 = vcmask 1041408   ;;  %s1838_s29 = sshll.u32 %s3030_s18, 7 }
  0x71   : > { %2607 = vmatprep.subr.bf16.mxu1 %v3047_v0  ;;  %2285 = vmatprep.mubr.msk.f32.mxu1 %vm3048_vm0, %v3049_v1  ;;  %v292_v6 = vand.u32 4294901760, %v265_v3  ;;  %v295_v8 = vand.u32 4294901760, %v3288_v4  ;;  %v298_v9 = vand.u32 4294901760, %v3290_v7  ;;  %v3294_v10 = vld [vmem:[#allocation7 + $0x20] sm:$0xff]  ;;  %v3296_v11 = vld [vmem:[#allocation7 + $0x28] sm:$0xff]  ;;  %v3305_v16 = vld [vmem:[#allocation7 + $0x30] sm:$0xff]  ;;  %s3748_s30 = scalar_lea.hbm %s3803_s4, %s1838_s29 }
  0x72   : > { %v301_v14 = vand.u32 4294901760, %v3294_v10  ;;  %v304_v15 = vand.u32 4294901760, %v3296_v11  ;;  %v3308_v17 = vld [vmem:[%s3272_s8] sm:$0x3]  ;;  %v3312_v18 = vld [vmem:[#allocation7 + $0x38] sm:$0xff]  ;;  %v307_v27 = vand.u32 4294901760, %v3305_v16  ;;  %v3347_v43 = vsub.f32 %v264_v2, %v289_v5 }
  0x73   : > { %v3298_v12 = vpack.c.bf16 %v292_v6, %v289_v5  ;;  %v3301_v13 = vpack.c.bf16 %v298_v9, %v295_v8  ;;  %v3315_v19 = vld [vmem:[%s3272_s8 + $0x2] sm:$0x3]  ;;  %v3318_v20 = vld [vmem:[%s3272_s8 + $0x4] sm:$0x3]  ;;  %v3322_v21 = vld [vmem:[%s3272_s8 + $0x6] sm:$0x3]  ;;  %v3350_v44 = vsub.f32 %v265_v3, %v292_v6  ;;  %v3361_v54 = vsub.f32 %v3288_v4, %v295_v8 }
  0x74   : > { %v281_v22 = vsel %vm280_vm1, %v3308_v17, 0.0  ;;  %v282_v23 = vsel %vm280_vm1, %v3315_v19, 0.0  ;;  %v284_v25 = vsel %vm280_vm1, %v3318_v20, 0.0  ;;  %v3333_v26 = vpack.c.bf16 %v304_v15, %v301_v14  ;;  %v272_v30 = vld [vmem:[#allocation7 + $0x40] sm:$0xff]  ;;  %v273_v31 = vld [vmem:[#allocation7 + $0x48] sm:$0xff]  ;;  %v274_v37 = vld [vmem:[#allocation7 + $0x50] sm:$0xff] }
  0x75   : > { %2465 = vmatpush3.bf16.msra.mxu0 %v3298_v12  ;;  %2609 = vmatpush3.bf16.msra.mxu1 %v3298_v12  ;;  %v283_v24 = vadd.f32 %v282_v23, %v281_v22  ;;  %v310_v28 = vand.u32 4294901760, %v3312_v18  ;;  %v286_v29 = vsel %vm280_vm1, %v3322_v21, 0.0  ;;  %v313_v35 = vand.u32 4294901760, %v272_v30  ;;  %v275_v38 = vld [vmem:[#allocation7 + $0x58] sm:$0xff]  ;;  %v276_v39 = vld [vmem:[#allocation7 + $0x60] sm:$0xff]  ;;  %v277_v40 = vld [vmem:[#allocation7 + $0x68] sm:$0xff] }
  0x76   : > { %2466 = vmatprep.subr.bf16.mxu0 %v3047_v0  ;;  %2610 = vmatprep.subr.bf16.mxu1 %v3047_v0  ;;  %v316_v36 = vand.u32 4294901760, %v273_v31  ;;  %v278_v41 = vld [vmem:[#allocation7 + $0x70] sm:$0xff]  ;;  %v279_v42 = vld [vmem:[#allocation7 + $0x78] sm:$0xff]  ;;  %v319_v45 = vand.u32 4294901760, %v274_v37  ;;  %v322_v46 = vand.u32 4294901760, %v275_v38  ;;  %v325_v47 = vand.u32 4294901760, %v276_v39 }
  0x77   : > { %v285_v32 = vadd.f32 %v284_v25, %v283_v24  ;;  %v3343_v34 = vpack.c.bf16 %v310_v28, %v307_v27  ;;  %v328_v50 = vand.u32 4294901760, %v277_v40  ;;  %v331_v51 = vand.u32 4294901760, %v278_v41  ;;  %s259_s6 = scalar_lea.vmem [#allocation8], %s1826_s11  ;;  %s1698_s18 = scalar_lea.sflag [#allocation4], %s3266_s21 }
  0x78   : > { %v3355_v49 = vpack.c.bf16 %v316_v36, %v313_v35  ;;  %v334_v52 = vand.u32 4294901760, %v279_v42  ;;  %v382_v53 = vand.u32 4294901760, %v3347_v43  ;;  %v3364_v55 = vsub.f32 %v3290_v7, %v298_v9  ;;  %s1712_s22 = sshll.u32 %s259_s6, 4  ;;  %p3826_p10 = scmp.ne.s32.totalorder %s3814_s27, 0  ;;  %s3750_s22 = int_to_ptr.vmem [resolvable:$true] %s1712_s22 }
  0x79   : > { %2468 = vmatpush3.bf16.msra.mxu0 %v3301_v13  ;;  %2612 = vmatpush3.bf16.msra.mxu1 %v3301_v13  ;;  %v287_v33 = vadd.f32 %v286_v29, %v285_v32  ;;  %v389_v56 = vand.u32 4294901760, %v3350_v44  ;;  %v3369_v57 = vsub.f32 %v3294_v10, %v301_v14  ;;  %v3371_v58 = vpack.c.bf16 %v322_v46, %v319_v45  ;;  %s2952_s23 = scalar_lea.vmem %s3750_s22, 128  ;;  %s3051_s7 = smov [#allocation8]  }
  0x7a   : > { %2469 = vmatprep.subr.bf16.mxu0 %v3047_v0  ;;  %2613 = vmatprep.subr.bf16.mxu1 %v3047_v0  ;;  %v3377_v60 = vpack.c.bf16 %v328_v50, %v325_v47  ;;  %v3379_v61 = vpack.c.bf16 %v334_v52, %v331_v51  ;;  %v3384_v62 = vsub.f32 %v3296_v11, %v304_v15  ;;  %v396_v2 = vand.u32 4294901760, %v3361_v54  ;;  %p2953_p12 = scmp.ne.s32.totalorder %s3750_s22, %s2952_s23  ;;  %s2956_s10 = sshll.u32 %s3051_s7, 4  ;;  %s2957_s10 = int_to_ptr.vmem [resolvable:$false] %s2956_s10 }
  0x7b   : > { %v3352_v48 = vand.u32 4294901760, %v287_v33  ;;  %v383_v63 = vsub.f32 %v3347_v43, %v382_v53  ;;  %v403_v3 = vand.u32 4294901760, %v3364_v55  ;;  %v3392_v4 = vsub.f32 %v3305_v16, %v307_v27  ;;  %s2958_s13 = scalar_lea.vmem %s2957_s10, 256  ;;  %p2959_p0 = scmp.lt.s32.totalorder %s3750_s22, %s2957_s10 }
  0x7c   : > { %v390_v5 = vsub.f32 %v3350_v44, %v389_v56  ;;  %v410_v6 = vand.u32 4294901760, %v3369_v57  ;;  %v3398_v7 = vsub.f32 %v3312_v18, %v310_v28  ;;  %v3400_v8 = vsub.f32 %v272_v30, %v313_v35  ;;  %p2954_p11 = pnand %p2953_p12, %p3826_p10  ;;  %p2960_p6 = scmp.lt.s32.totalorder %s2958_s13, %s2952_s23 }
  0x7d   : > { %2471 = vmatpush3.bf16.msra.mxu0 %v3333_v26  ;;  %2615 = vmatpush3.bf16.msra.mxu1 %v3333_v26  ;;  %v3374_v59 = vsub.f32 %v287_v33, %v3352_v48  ;;  %v3403_v10 = vsub.f32 %v273_v31, %v316_v36  ;;  %v3405_v11 = vsub.f32 %v274_v37, %v319_v45  ;;  %v417_v15 = vand.u32 4294901760, %v3384_v62 }
  0x7e   : > { %2472 = vmatprep.subr.bf16.mxu0 %v3047_v0  ;;  %2616 = vmatprep.subr.bf16.mxu1 %v3047_v0  ;;  %v3407_v14 = vsub.f32 %v275_v38, %v322_v46  ;;  %v3411_v16 = vsub.f32 %v276_v39, %v325_v47  ;;  %v3413_v22 = vsub.f32 %v277_v40, %v328_v50  ;;  %v384_v23 = vand.u32 4294901760, %v383_v63  ;;  %p2955_p1 = pneg %p2954_p11  ;;  %p2961_p9 = por %p2960_p6, %p2959_p0 }
  0x7f   : > { %v3810_v9 = vand.u32 4294901760, %v3374_v59  ;;  %v3415_v18 = vsub.f32 %v278_v41, %v331_v51  ;;  %v397_v24 = vsub.f32 %v3361_v54, %v396_v2  ;;  %v424_v25 = vand.u32 4294901760, %v3392_v4 }
  0x80   : > { %v3421_v27 = vsub.f32 %v279_v42, %v334_v52  ;;  %v391_v28 = vand.u32 4294901760, %v390_v5  ;;  %v404_v29 = vsub.f32 %v3364_v55, %v403_v3  ;;  %v431_v30 = vand.u32 4294901760, %v3398_v7  ;;  %p2962_p8 = pnand %p2961_p9, %p2955_p1 }
  0x81   : > { %2474 = vmatpush3.bf16.msra.mxu0 %v3343_v34  ;;  %2618 = vmatpush3.bf16.msra.mxu1 %v3343_v34  ;;  %v438_v31 = vand.u32 4294901760, %v3400_v8  ;;  %v372_v32 = vsub.f32 %v3374_v59, %v3810_v9  ;;  %v445_v33 = vand.u32 4294901760, %v3403_v10  ;;  %v452_v35 = vand.u32 4294901760, %v3405_v11 }
  0x82   : > { %2475 = vmatprep.subr.bf16.mxu0 %v3047_v0  ;;  %2619 = vmatprep.subr.bf16.mxu1 %v3047_v0  ;;  %v459_v36 = vand.u32 4294901760, %v3407_v14  ;;  %v466_v37 = vand.u32 4294901760, %v3411_v16  ;;  %v473_v38 = vand.u32 4294901760, %v3413_v22  ;;  %v480_v39 = vand.u32 4294901760, %v3415_v18 }
  0x83   : > { %v3437_v40 = vpack.c.bf16 %v389_v56, %v382_v53  ;;  %v487_v41 = vand.u32 4294901760, %v3421_v27  ;;  %v3441_v42 = vpack.c.bf16 %v403_v3, %v396_v2  ;;  %v3443_v45 = vpack.c.bf16 %v417_v15, %v410_v6 }
  0x84   : > { %v3445_v46 = vpack.c.bf16 %v431_v30, %v424_v25  ;;  %v3448_v47 = vpack.c.bf16 %v445_v33, %v438_v31  ;;  %v3450_v50 = vpack.c.bf16 %v459_v36, %v452_v35  ;;  %v3452_v51 = vpack.c.bf16 %v473_v38, %v466_v37 }
  0x85   : > { %2477 = vmatpush3.bf16.msra.mxu0 %v3355_v49  ;;  %2621 = vmatpush3.bf16.msra.mxu1 %v3355_v49  ;;  %v373_v52 = vand.u32 4294901760, %v372_v32  ;;  %v411_v53 = vsub.f32 %v3369_v57, %v410_v6  ;;  %v3456_v56 = vpack.c.bf16 %v487_v41, %v480_v39  ;;  %v3459_v63 = vpack.c.bf16 %v391_v28, %v384_v23 }
  0x86   : > { %2478 = vmatprep.subr.bf16.mxu0 %v3047_v0  ;;  %2622 = vmatprep.subr.bf16.mxu1 %v3047_v0  ;;  %v398_v2 = vand.u32 4294901760, %v397_v24  ;;  %v405_v3 = vand.u32 4294901760, %v404_v29  ;;  %v418_v5 = vsub.f32 %v3384_v62, %v417_v15  ;;  %v425_v32 = vsub.f32 %v3392_v4, %v424_v25 }
  0x87   : > { %v412_v9 = vand.u32 4294901760, %v411_v53  ;;  %v432_v24 = vsub.f32 %v3398_v7, %v431_v30  ;;  %v439_v25 = vsub.f32 %v3400_v8, %v438_v31  ;;  %v453_v53 = vsub.f32 %v3405_v11, %v452_v35 }
  0x88   : > { %v3467_v6 = vpack.c.bf16 %v405_v3, %v398_v2  ;;  %v419_v23 = vand.u32 4294901760, %v418_v5  ;;  %v426_v15 = vand.u32 4294901760, %v425_v32  ;;  %v460_v5 = vsub.f32 %v3407_v14, %v459_v36 }
  0x89   : > { %2480 = vmatpush3.bf16.msra.mxu0 %v3371_v58  ;;  %2624 = vmatpush3.bf16.msra.mxu1 %v3371_v58  ;;  %v433_v29 = vand.u32 4294901760, %v432_v24  ;;  %v440_v2 = vand.u32 4294901760, %v439_v25  ;;  %v474_v35 = vsub.f32 %v3413_v22, %v473_v38 }
  0x8a   : > { %2481 = vmatprep.subr.bf16.mxu0 %v3047_v0  ;;  %2625 = vmatprep.subr.bf16.mxu1 %v3047_v0  ;;  %v3474_v28 = vpack.c.bf16 %v419_v23, %v412_v9  ;;  %v467_v9 = vsub.f32 %v3411_v16, %v466_v37  ;;  %v461_v32 = vand.u32 4294901760, %v460_v5  ;;  %v488_v37 = vsub.f32 %v3421_v27, %v487_v41 }
  0x8b   : > { %v3481_v30 = vpack.c.bf16 %v433_v29, %v426_v15  ;;  %v475_v36 = vand.u32 4294901760, %v474_v35  ;;  %v481_v15 = vsub.f32 %v3415_v18, %v480_v39  ;;  %v3508_v39 = vpack.c.bf16 %v3350_v44, %v3347_v43 }
  0x8c   : > { %v468_v23 = vand.u32 4294901760, %v467_v9  ;;  %v489_v38 = vand.u32 4294901760, %v488_v37  ;;  %v3515_v41 = vpack.c.bf16 %v3364_v55, %v3361_v54  ;;  %v3523_v43 = vpack.c.bf16 %v3384_v62, %v3369_v57 }
  0x8d   : > { %2483 = vmatpush3.bf16.msra.mxu0 %v3377_v60  ;;  %2627 = vmatpush3.bf16.msra.mxu1 %v3377_v60  ;;  %v482_v25 = vand.u32 4294901760, %v481_v15  ;;  %v3529_v44 = vpack.c.bf16 %v3398_v7, %v3392_v4  ;;  %v3535_v54 = vpack.c.bf16 %v3403_v10, %v3400_v8  ;;  %v3541_v55 = vpack.c.bf16 %v3407_v14, %v3405_v11 }
  0x8e   : > { %2484 = vmatprep.subr.bf16.mxu0 %v3047_v0  ;;  %2628 = vmatprep.subr.bf16.mxu1 %v3047_v0  ;;  %v3498_v29 = vpack.c.bf16 %v475_v36, %v468_v23  ;;  %v3547_v57 = vpack.c.bf16 %v3413_v22, %v3411_v16  ;;  %v3553_v62 = vpack.c.bf16 %v3421_v27, %v3415_v18  ;;  %v3825_v4 = vand.u32 4294901760, %v3374_v59 }
  0x91   : > { %2486 = vmatpush3.bf16.msra.mxu0 %v3379_v61  ;;  %2630 = vmatpush3.bf16.msra.mxu1 %v3379_v61 }
  0x92   : > { %2487 = vmatprep.subr.bf16.mxu0 %v3047_v0  ;;  %2631 = vmatprep.subr.bf16.mxu1 %v3047_v0 }
  0x94   : > { %2076 = vmatmul.mubr.f32.vlgmr.msra.gmra.mrb[0].mxu0 %v373_v52  ;;  %v446_v52 = vsub.f32 %v3403_v10, %v445_v33  ;;  %v454_v33 = vand.u32 4294901760, %v453_v53 }
  0x95   : > { %2489 = vmatpush3.bf16.msra.mxu0 %v3459_v63  ;;  %2110 = vmatprep.mubr.msk.f32.mxu0 %vm3048_vm0, %v3049_v1 }
  0x96   : > { %2490 = vmatprep.subr.bf16.mxu0 %v3047_v0  ;;  %v447_v3 = vand.u32 4294901760, %v446_v52  ;;  %v3492_v24 = vpack.c.bf16 %v461_v32, %v454_v33  ;;  %v3502_v52 = vpack.c.bf16 %v489_v38, %v482_v25 }
  0x98   : > { %v3487_v31 = vpack.c.bf16 %v447_v3, %v440_v2 }
  0x99   : > { %2492 = vmatpush3.bf16.msra.mxu0 %v3467_v6 }
  0x9a   : > { %2493 = vmatprep.subr.bf16.mxu0 %v3047_v0 }
  0x9d   : > { %2495 = vmatpush3.bf16.msra.mxu0 %v3474_v28 }
  0x9e   : > { %2496 = vmatprep.subr.bf16.mxu0 %v3047_v0 }
  0xa1   : > { %2498 = vmatpush3.bf16.msra.mxu0 %v3481_v30 }
  0xa2   : > { %2499 = vmatprep.subr.bf16.mxu0 %v3047_v0 }
  0xa5   : > { %2501 = vmatpush3.bf16.msra.mxu0 %v3487_v31 }
  0xa6   : > { %2502 = vmatprep.subr.bf16.mxu0 %v3047_v0 }
  0xa9   : > { %2504 = vmatpush3.bf16.msra.mxu0 %v3492_v24 }
  0xaa   : > { %2505 = vmatprep.subr.bf16.mxu0 %v3047_v0 }
  0xad   : > { %2507 = vmatpush3.bf16.msra.mxu0 %v3498_v29 }
  0xae   : > { %2508 = vmatprep.subr.bf16.mxu0 %v3047_v0 }
  0xb1   : > { %2510 = vmatpush3.bf16.msra.mxu0 %v3502_v52 }
  0xb2   : > { %2511 = vmatprep.subr.bf16.mxu0 %v3047_v0 }
  0xb4   : > { %2111 = vmatmul.mubr.f32.vlgmr.msra.gmra.mrb[0].mxu0 %v3352_v48 }
  0xb5   : > { %2513 = vmatpush3.bf16.msra.mxu0 %v3508_v39  ;;  %2145 = vmatprep.mubr.msk.f32.mxu0 %vm3048_vm0, %v3049_v1 }
  0xb6   : > { %2514 = vmatprep.subr.bf16.mxu0 %v3047_v0 }
  0xb9   : > { %2516 = vmatpush3.bf16.msra.mxu0 %v3515_v41 }
  0xba   : > { %2517 = vmatprep.subr.bf16.mxu0 %v3047_v0 }
  0xbd   : > { %2519 = vmatpush3.bf16.msra.mxu0 %v3523_v43 }
  0xbe   : > { %2520 = vmatprep.subr.bf16.mxu0 %v3047_v0 }
  0xc1   : > { %2522 = vmatpush3.bf16.msra.mxu0 %v3529_v44 }
  0xc2   : > { %2523 = vmatprep.subr.bf16.mxu0 %v3047_v0 }
  0xc5   : > { %2525 = vmatpush3.bf16.msra.mxu0 %v3535_v54 }
  0xc6   : > { %2526 = vmatprep.subr.bf16.mxu0 %v3047_v0 }
  0xc9   : > { %2528 = vmatpush3.bf16.msra.mxu0 %v3541_v55 }
  0xca   : > { %2529 = vmatprep.subr.bf16.mxu0 %v3047_v0 }
  0xcd   : > { %2531 = vmatpush3.bf16.msra.mxu0 %v3547_v57 }
  0xce   : > { %2532 = vmatprep.subr.bf16.mxu0 %v3047_v0 }
  0xd1   : > { %2534 = vmatpush3.bf16.msra.mxu0 %v3553_v62 }
  0xd2   : > { %2535 = vmatprep.subr.bf16.mxu0 %v3047_v0 }
  0xd4   : > { %2146 = vmatmul.mubr.f32.vlgmr.msra.gmra.mrb[0].mxu0 %v3374_v59 }
  0xd5   : > { %2537 = vmatpush3.bf16.msra.mxu0 %v3298_v12  ;;  %2180 = vmatprep.mubr.msk.f32.mxu0 %vm3048_vm0, %v3049_v1 }
  0xd6   : > { %2538 = vmatprep.subr.bf16.mxu0 %v3047_v0 }
  0xd9   : > { %2540 = vmatpush3.bf16.msra.mxu0 %v3301_v13 }
  0xda   : > { %2541 = vmatprep.subr.bf16.mxu0 %v3047_v0 }
  0xdd   : > { %2543 = vmatpush3.bf16.msra.mxu0 %v3333_v26 }
  0xde   : > { %2544 = vmatprep.subr.bf16.mxu0 %v3047_v0 }
  0xe1   : > { %2546 = vmatpush3.bf16.msra.mxu0 %v3343_v34 }
  0xe2   : > { %2547 = vmatprep.subr.bf16.mxu0 %v3047_v0 }
  0xe5   : > { %2549 = vmatpush3.bf16.msra.mxu0 %v3355_v49 }
  0xe6   : > { %2550 = vmatprep.subr.bf16.mxu0 %v3047_v0 }
  0xe9   : > { %2552 = vmatpush3.bf16.msra.mxu0 %v3371_v58 }
  0xea   : > { %2553 = vmatprep.subr.bf16.mxu0 %v3047_v0 }
  0xed   : > { %2555 = vmatpush3.bf16.msra.mxu0 %v3377_v60 }
  0xee   : > { %2556 = vmatprep.subr.bf16.mxu0 %v3047_v0 }
  0xf1   : > { %2558 = vmatpush3.bf16.msra.mxu0 %v3379_v61 }
  0xf2   : > { %2559 = vmatprep.subr.bf16.mxu0 %v3047_v0 }
  0xf4   : > { %2181 = vmatmul.mubr.f32.vlgmr.msra.gmra.mrb[0].mxu0 %v3825_v4 }
  0xf5   : > { %2561 = vmatpush3.bf16.msra.mxu0 %v3437_v40  ;;  %2215 = vmatprep.mubr.msk.f32.mxu0 %vm3048_vm0, %v3049_v1 }
  0xf6   : > { %2562 = vmatprep.subr.bf16.mxu0 %v3047_v0 }
  0xf9   : > { %2564 = vmatpush3.bf16.msra.mxu0 %v3441_v42 }
  0xfa   : > { %2565 = vmatprep.subr.bf16.mxu0 %v3047_v0 }
  0xfd   : > { %2567 = vmatpush3.bf16.msra.mxu0 %v3443_v45 }
  0xfe   : > { %2568 = vmatprep.subr.bf16.mxu0 %v3047_v0 }
 0x101   : > { %2570 = vmatpush3.bf16.msra.mxu0 %v3445_v46 }
 0x102   : > { %2571 = vmatprep.subr.bf16.mxu0 %v3047_v0 }
 0x105   : > { %2573 = vmatpush3.bf16.msra.mxu0 %v3448_v47 }
 0x106   : > { %2574 = vmatprep.subr.bf16.mxu0 %v3047_v0 }
 0x109   : > { %2576 = vmatpush3.bf16.msra.mxu0 %v3450_v50 }
 0x10a   : > { %2577 = vmatprep.subr.bf16.mxu0 %v3047_v0 }
 0x10d   : > { %2579 = vmatpush3.bf16.msra.mxu0 %v3452_v51 }
 0x10e   : > { %2580 = vmatprep.subr.bf16.mxu0 %v3047_v0 }
 0x111   : > { %2582 = vmatpush3.bf16.msra.mxu0 %v3456_v56 }
 0x112   : > { %2583 = vmatprep.subr.bf16.mxu0 %v3047_v0 }
 0x114   : > { %2216 = vmatmul.mubr.f32.vlgmr.msra.gmra.mrb[0].mxu0 %v3352_v48 }
 0x115   : > { %2585 = vmatpush3.bf16.msra.mxu0 %v3298_v12  ;;  %2250 = vmatprep.mubr.msk.f32.mxu0 %vm3048_vm0, %v3049_v1 }
 0x116   : > { %2586 = vmatprep.subr.bf16.mxu0 %v3047_v0 }
 0x119   : > { %2588 = vmatpush3.bf16.msra.mxu0 %v3301_v13 }
 0x11a   : > { %2589 = vmatprep.subr.bf16.mxu0 %v3047_v0 }
 0x11d   : > { %2591 = vmatpush3.bf16.msra.mxu0 %v3333_v26 }
 0x11e   : > { %2592 = vmatprep.subr.bf16.mxu0 %v3047_v0 }
 0x121   : > { %2594 = vmatpush3.bf16.msra.mxu0 %v3343_v34 }
 0x122   : > { %2595 = vmatprep.subr.bf16.mxu0 %v3047_v0 }
 0x125   : > { %2597 = vmatpush3.bf16.msra.mxu0 %v3355_v49 }
 0x126   : > { %2598 = vmatprep.subr.bf16.mxu0 %v3047_v0 }
 0x129   : > { %2600 = vmatpush3.bf16.msra.mxu0 %v3371_v58 }
 0x12a   : > { %2601 = vmatprep.subr.bf16.mxu0 %v3047_v0 }
 0x12d   : > { %2603 = vmatpush3.bf16.msra.mxu0 %v3377_v60 }
 0x12e   : > { %2604 = vmatprep.subr.bf16.mxu0 %v3047_v0 }
 0x131   : > { %2606 = vmatpush3.bf16.msra.mxu0 %v3379_v61 }
 0x134   : > { %2251 = vmatmul.mubr.f32.vlgmr.msra.gmra.mrb[0].mxu0 %v3352_v48 }
 0x207   : > { %v925_v59 = vpop.f32.mrb[0].mxu0 }
 0x208   : > { %v929_v7 = vmul.f32 0.015625, %v925_v59  ;;  %v2252_v8 = vpop.f32.mrb[1].mxu0 }
 0x20a   : > { %v3617_v10 = vsub.f32 %v3308_v17, %v929_v7  ;;  %v3620_v11 = vsub.f32 %v3315_v19, %v929_v7  ;;  %v3623_v14 = vsub.f32 %v3318_v20, %v929_v7  ;;  %v3626_v16 = vsub.f32 %v3322_v21, %v929_v7 }
 0x20c   : > { %v934_v22 = vmul.f32 %v3617_v10, %v3617_v10  ;;  %v935_v48 = vmul.f32 %v3620_v11, %v3620_v11  ;;  %v936_v18 = vmul.f32 %v3623_v14, %v3623_v14  ;;  %v937_v17 = vmul.f32 %v3626_v16, %v3626_v16 }
 0x20e   : > { %v938_v19 = vsel %vm280_vm1, %v934_v22, 0.0  ;;  %v939_v20 = vsel %vm280_vm1, %v935_v48, 0.0  ;;  %v941_v21 = vsel %vm280_vm1, %v936_v18, 0.0  ;;  %v943_v2 = vsel %vm280_vm1, %v937_v17, 0.0 }
 0x20f   : > { %v940_v27 = vadd.f32 %v939_v20, %v938_v19 }
 0x211   : > { %v942_v53 = vadd.f32 %v941_v21, %v940_v27 }
 0x213   : > { %v944_v3 = vadd.f32 %v943_v2, %v942_v53 }
 0x215   : > { %v3640_v5 = vand.u32 4294901760, %v944_v3 }
 0x217   : > { %v1027_v9 = vsub.f32 %v944_v3, %v3640_v5 }
 0x219   : > { %v1028_v33 = vand.u32 4294901760, %v1027_v9 }
 0x21b   : > { %v1029_v32 = vsub.f32 %v1027_v9, %v1028_v33 }
 0x21d   : > { %v1030_v35 = vand.u32 4294901760, %v1029_v32 }
 0x21f   : > { %2286 = vmatmul.mubr.f32.vlgmr.msra.gmra.mrb[0].mxu1 %v1030_v35 }
 0x220   : > { %2633 = vmatpush3.bf16.msra.mxu1 %v3459_v63  ;;  %2320 = vmatprep.mubr.msk.f32.mxu1 %vm3048_vm0, %v3049_v1 }
 0x221   : > { %2634 = vmatprep.subr.bf16.mxu1 %v3047_v0 }
 0x224   : > { %2636 = vmatpush3.bf16.msra.mxu1 %v3467_v6 }
 0x225   : > { %2637 = vmatprep.subr.bf16.mxu1 %v3047_v0 }
 0x228   : > { %2639 = vmatpush3.bf16.msra.mxu1 %v3474_v28 }
 0x229   : > { %2640 = vmatprep.subr.bf16.mxu1 %v3047_v0 }
 0x22c   : > { %2642 = vmatpush3.bf16.msra.mxu1 %v3481_v30 }
 0x22d   : > { %2643 = vmatprep.subr.bf16.mxu1 %v3047_v0 }
 0x230   : > { %2645 = vmatpush3.bf16.msra.mxu1 %v3487_v31 }
 0x231   : > { %2646 = vmatprep.subr.bf16.mxu1 %v3047_v0 }
 0x234   : > { %2648 = vmatpush3.bf16.msra.mxu1 %v3492_v24 }
 0x235   : > { %2649 = vmatprep.subr.bf16.mxu1 %v3047_v0 }
 0x238   : > { %2651 = vmatpush3.bf16.msra.mxu1 %v3498_v29 }
 0x239   : > { %2652 = vmatprep.subr.bf16.mxu1 %v3047_v0 }
 0x23c   : > { %2654 = vmatpush3.bf16.msra.mxu1 %v3502_v52 }
 0x23d   : > { %2655 = vmatprep.subr.bf16.mxu1 %v3047_v0 }
 0x23f   : > { %2321 = vmatmul.mubr.f32.vlgmr.msra.gmra.mrb[0].mxu1 %v3640_v5 }
 0x240   : > { %2657 = vmatpush3.bf16.msra.mxu1 %v3508_v39  ;;  %2355 = vmatprep.mubr.msk.f32.mxu1 %vm3048_vm0, %v3049_v1 }
 0x241   : > { %2658 = vmatprep.subr.bf16.mxu1 %v3047_v0 }
 0x244   : > { %2660 = vmatpush3.bf16.msra.mxu1 %v3515_v41 }
 0x245   : > { %2661 = vmatprep.subr.bf16.mxu1 %v3047_v0 }
 0x248   : > { %2663 = vmatpush3.bf16.msra.mxu1 %v3523_v43 }
 0x249   : > { %2664 = vmatprep.subr.bf16.mxu1 %v3047_v0 }
 0x24c   : > { %2666 = vmatpush3.bf16.msra.mxu1 %v3529_v44 }
 0x24d   : > { %2667 = vmatprep.subr.bf16.mxu1 %v3047_v0 }
 0x250   : > { %2669 = vmatpush3.bf16.msra.mxu1 %v3535_v54 }
 0x251   : > { %2670 = vmatprep.subr.bf16.mxu1 %v3047_v0 }
 0x254   : > { %2672 = vmatpush3.bf16.msra.mxu1 %v3541_v55 }
 0x255   : > { %2673 = vmatprep.subr.bf16.mxu1 %v3047_v0 }
 0x258   : > { %2675 = vmatpush3.bf16.msra.mxu1 %v3547_v57 }
 0x259   : > { %2676 = vmatprep.subr.bf16.mxu1 %v3047_v0 }
 0x25c   : > { %2678 = vmatpush3.bf16.msra.mxu1 %v3553_v62 }
 0x25d   : > { %2679 = vmatprep.subr.bf16.mxu1 %v3047_v0 }
 0x25f   : > { %2356 = vmatmul.mubr.f32.vlgmr.msra.gmra.mrb[0].mxu1 %v1027_v9 }
 0x260   : > { %2681 = vmatpush3.bf16.msra.mxu1 %v3298_v12  ;;  %2390 = vmatprep.mubr.msk.f32.mxu1 %vm3048_vm0, %v3049_v1 }
 0x261   : > { %2682 = vmatprep.subr.bf16.mxu1 %v3047_v0 }
 0x264   : > { %2684 = vmatpush3.bf16.msra.mxu1 %v3301_v13 }
 0x265   : > { %2685 = vmatprep.subr.bf16.mxu1 %v3047_v0 }
 0x268   : > { %2687 = vmatpush3.bf16.msra.mxu1 %v3333_v26 }
 0x269   : > { %2688 = vmatprep.subr.bf16.mxu1 %v3047_v0 }
 0x26c   : > { %2690 = vmatpush3.bf16.msra.mxu1 %v3343_v34 }
 0x26d   : > { %2691 = vmatprep.subr.bf16.mxu1 %v3047_v0 }
 0x270   : > { %2693 = vmatpush3.bf16.msra.mxu1 %v3355_v49 }
 0x271   : > { %2694 = vmatprep.subr.bf16.mxu1 %v3047_v0 }
 0x274   : > { %2696 = vmatpush3.bf16.msra.mxu1 %v3371_v58 }
 0x275   : > { %2697 = vmatprep.subr.bf16.mxu1 %v3047_v0 }
 0x278   : > { %2699 = vmatpush3.bf16.msra.mxu1 %v3377_v60 }
 0x279   : > { %2700 = vmatprep.subr.bf16.mxu1 %v3047_v0 }
 0x27c   : > { %2702 = vmatpush3.bf16.msra.mxu1 %v3379_v61 }
 0x27d   : > { %2703 = vmatprep.subr.bf16.mxu1 %v3047_v0 }
 0x27f   : > { %2391 = vmatmul.mubr.f32.vlgmr.msra.gmra.mrb[0].mxu1 %v1028_v33 }
 0x280   : > { %2705 = vmatpush3.bf16.msra.mxu1 %v3437_v40  ;;  %2425 = vmatprep.mubr.msk.f32.mxu1 %vm3048_vm0, %v3049_v1 }
 0x281   : > { %2706 = vmatprep.subr.bf16.mxu1 %v3047_v0 }
 0x284   : > { %2708 = vmatpush3.bf16.msra.mxu1 %v3441_v42 }
 0x285   : > { %2709 = vmatprep.subr.bf16.mxu1 %v3047_v0 }
 0x288   : > { %2711 = vmatpush3.bf16.msra.mxu1 %v3443_v45 }
 0x289   : > { %2712 = vmatprep.subr.bf16.mxu1 %v3047_v0 }
 0x28c   : > { %2714 = vmatpush3.bf16.msra.mxu1 %v3445_v46 }
 0x28d   : > { %2715 = vmatprep.subr.bf16.mxu1 %v3047_v0 }
 0x290   : > { %2717 = vmatpush3.bf16.msra.mxu1 %v3448_v47 }
 0x291   : > { %2718 = vmatprep.subr.bf16.mxu1 %v3047_v0 }
 0x294   : > { %2720 = vmatpush3.bf16.msra.mxu1 %v3450_v50 }
 0x295   : > { %2721 = vmatprep.subr.bf16.mxu1 %v3047_v0 }
 0x298   : > { %2723 = vmatpush3.bf16.msra.mxu1 %v3452_v51 }
 0x299   : > { %2724 = vmatprep.subr.bf16.mxu1 %v3047_v0 }
 0x29c   : > { %2726 = vmatpush3.bf16.msra.mxu1 %v3456_v56 }
 0x29d   : > { %2727 = vmatprep.subr.bf16.mxu1 %v3047_v0 }
 0x29f   : > { %2426 = vmatmul.mubr.f32.vlgmr.msra.gmra.mrb[0].mxu1 %v3640_v5 }
 0x2a0   : > { %2729 = vmatpush3.bf16.msra.mxu1 %v3298_v12  ;;  %2460 = vmatprep.mubr.msk.f32.mxu1 %vm3048_vm0, %v3049_v1  ;;  %v3050_v1 = vmov 1966171168  }
 0x2a1   : > { %2730 = vmatprep.subr.bf16.mxu1 %v3047_v0  ;;  %v1604_v12 = vunpack.c.l.s4 %v3050_v1 }
 0x2a4   : > { %2732 = vmatpush3.bf16.msra.mxu1 %v3301_v13  ;;  %v1606_v13 = vlaneseq }
 0x2a5   : > { %2733 = vmatprep.subr.bf16.mxu1 %v3047_v0 }
 0x2a8   : > { %2735 = vmatpush3.bf16.msra.mxu1 %v3333_v26  ;;  %v1605_v26 = vunpack.c.0.s8 %v1604_v12 }
 0x2a9   : > { %2736 = vmatprep.subr.bf16.mxu1 %v3047_v0 }
 0x2ac   : > { %2738 = vmatpush3.bf16.msra.mxu1 %v3343_v34  ;;  %v1607_v34 = vshrl.u32 %v1606_v13, 7 }
 0x2ad   : > { %2739 = vmatprep.subr.bf16.mxu1 %v3047_v0 }
 0x2ae   : > { %v1608_v46 = vsub.s32 %v1605_v26, %v1607_v34  ;;  %v1621_v28 = vsub.s32 0, %v1607_v34 }
 0x2b0   : > { %2741 = vmatpush3.bf16.msra.mxu1 %v3355_v49  ;;  %v1830_v49 = vld.sshfl [vmem:[#allocation5] sm:$0x33 pattern:$0x75316420] }
 0x2b1   : > { %2742 = vmatprep.subr.bf16.mxu1 %v3047_v0 }
 0x2b4   : > { %2744 = vmatpush3.bf16.msra.mxu1 %v3371_v58  ;;  %v1831_v58 = vld.sshfl [vmem:[%s3801_s2] sm:$0x33 pattern:$0x75316420] }
 0x2b5   : > { %2745 = vmatprep.subr.bf16.mxu1 %v3047_v0  ;;  %v1652_v47 = vcombine.high %v1831_v58, %v1831_v58  ;;  %v1659_v51 = vrot.slane %v1831_v58, %v1608_v46 }
 0x2b7   : > { %v1666_v56 = vrot.slane %v1652_v47, %v1608_v46  ;;  %v1667_v30 = vcombine.high %v1659_v51, %v1659_v51  ;;  %v1672_v29 = vrot.slane %v1659_v51, %v1621_v28 }
 0x2b8   : > { %2747 = vmatpush3.bf16.msra.mxu1 %v3377_v60  ;;  %v1602_v60 = vcombine.high %v1830_v49, %v1830_v49 }
 0x2b9   : > { %2748 = vmatprep.subr.bf16.mxu1 %v3047_v0  ;;  %v1668_v31 = vcombine.high %v1666_v56, %v1666_v56  ;;  %v1676_v25 = vrot.slane %v1666_v56, %v1621_v28  ;;  %v1680_v38 = vrot.slane %v1667_v30, %v1621_v28 }
 0x2ba   : > { %v1616_v50 = vrot.slane %v1602_v60, %v1608_v46 }
 0x2bb   : > { %v1684_v52 = vrot.slane %v1668_v31, %v1621_v28 }
 0x2bc   : > { %2750 = vmatpush3.bf16.msra.mxu1 %v3379_v61  ;;  %v1609_v61 = vrot.slane %v1830_v49, %v1608_v46  ;;  %v1618_v6 = vcombine.high %v1616_v50, %v1616_v50  ;;  %v1626_v24 = vrot.slane %v1616_v50, %v1621_v28 }
 0x2be   : > { %v1617_v63 = vcombine.high %v1609_v61, %v1609_v61  ;;  %v1622_v23 = vrot.slane %v1609_v61, %v1621_v28  ;;  %v1634_v15 = vrot.slane %v1618_v6, %v1621_v28 }
 0x2bf   : > { %2461 = vmatmul.mubr.f32.vlgmr.msra.gmra.mrb[0].mxu1 %v3640_v5 }
 0x2c0   : > { %v1630_v36 = vrot.slane %v1617_v63, %v1621_v28 }
 0x392   : > { %v1582_v40 = vpop.f32.mrb[0].mxu1 }
 0x393   : > { %v1586_v42 = vmul.f32 0.015625, %v1582_v40  ;;  %v2462_v45 = vpop.f32.mrb[1].mxu1 }
 0x395   : > { %v1587_v0 = vadd.f32 1e-12, %v1586_v42 }
 0x397   : > { %2864 = vrsqrt.f32 %v1587_v0 }
 0x3a1   : > { %v2865_v37 = vpop.eup %2864 }
 0x3a2   : > { %v1589_v39 = vmul.f32 %v2865_v37, %v3617_v10  ;;  %v1590_v41 = vmul.f32 %v2865_v37, %v3620_v11  ;;  %v1591_v43 = vmul.f32 %v2865_v37, %v3623_v14  ;;  %v1592_v44 = vmul.f32 %v2865_v37, %v3626_v16 }
 0x3a4   : > { %v1639_v54 = vmul.f32 %v1622_v23, %v1589_v39  ;;  %v1640_v55 = vmul.f32 %v1626_v24, %v1590_v41  ;;  %v1641_v57 = vmul.f32 %v1630_v36, %v1591_v43  ;;  %v1642_v62 = vmul.f32 %v1634_v15, %v1592_v44 }
 0x3a6   : > { %v1689_v4 = vadd.f32 %v1672_v29, %v1639_v54  ;;  %v1690_v59 = vadd.f32 %v1676_v25, %v1640_v55  ;;  %v1691_v7 = vadd.f32 %v1680_v38, %v1641_v57  ;;  %v1692_v8 = vadd.f32 %v1684_v52, %v1642_v62 }
 0x3a8   : > { %1693 = vst [vmem:[%s259_s6] sm:$0x3] %v1689_v4  ;;  %1694 = vst [vmem:[%s259_s6 + $0x2] sm:$0x3] %v1690_v59 }
 0x3a9   : > { %1695 = vst [vmem:[%s259_s6 + $0x4] sm:$0x3] %v1691_v7  ;;  %1696 = vst [vmem:[%s259_s6 + $0x6] sm:$0x3] %v1692_v8 }
 0x3aa   : > { %2965 = shalt.err (!%p2962_p8)
}
 0x3ab   : > { %s2966_s11 = scalar_lea.hbm %s3748_s30, 128  ;;  %s2970_s24 = scalar_lea.hbm %s3803_s4, 256 }
 0x3ac   : > { %p2967_p13 = scmp.ne.s32.totalorder %s3748_s30, %s2966_s11  ;;  %p2971_p7 = scmp.lt.u32.totalorder %s3748_s30, %s3803_s4 }
 0x3ad   : > { %p2972_p3 = scmp.lt.u32.totalorder %s2970_s24, %s2966_s11  ;;  %p2974_p12 = scmp.lt.u32.totalorder %s2966_s11, %s3748_s30 }
 0x3ae   : > { %p2968_p4 = pnand %p2967_p13, %p3826_p10 }
 0x3af   : > { %p2973_p2 = por %p2972_p3, %p2971_p7 }
 0x3b0   : > { %p2969_p5 = pneg %p2968_p4 }
 0x3b1   : > { %p2975_p11 = por %p2974_p12, %p2973_p2 }
 0x3b3   : > { %p2976_p1 = pnand %p2975_p11, %p2969_p5 }
 0x3b5   : > { %2979 = shalt.err (!%p2976_p1)
}
 0x3b6   : > { %s3052_s6 = smov 32   ;;  %s3053_s9 = smov 2  }
 0x3b7   : > { %2781 = dma.vmem_to_hbm [thread:$0]  (%p3826_p10), %s3750_s22, 128, %s3748_s30, %s1698_s18, %s3052_s6, %s3052_s6, %s3053_s9  }
 0x3b8 PF: > { %s1727_s25 = sand.u32 1, %s3018_s15   ;;  %p3827_p0 = scmp.ne.s32.totalorder %s3815_s28, 0 }
 0x3b9   : > { %p3828_p6 = scmp.ge.s32.totalorder %s3038_s20, 2  ;;  %s1728_s23 = scalar_lea.sflag [#allocation4], %s1727_s25 }
 0x3bb   : > { %p2795_p9 = pnand %p3828_p6, %p3827_p0 }
 0x3bd   : > { %3013 = dma.done.wait (!%p2795_p9), %s1728_s23, 128  }
 0x3be   : > { %3015 = vsyncadd (!%p2795_p9), %s1728_s23, 4294967168  ;;  %s21_s20 = sadd.s32 1, %s3038_s20   ;;  %s3829_s15 = smov %s3022_s16 }
 0x3bf   : > { %p18_p8 = scmp.ge.s32.totalorder %s21_s20, 4   ;;  %s3830_s16 = smov %s3026_s17 }
 0x3c0   : > { %s3831_s17 = smov %s3261_s14  ;;  %s3832_s18 = smov %s3034_s19 }
 0x3c1   : > { %s3833_s19 = smov %s3835_s12  ;;  %20 = sbr.rel (!%p18_p8) target bundleno = 7 (0x7), region = 89 }
 0x3c8   :  { %1733 = vsyncpa [#allocation3], 1 }
 0x3c9   :  { %1735 = vsyncpa [#allocation3 + $0x1], 1 }
 0x3ca   :  { %1736 = vsyncpa [#allocation6], 1 }
 0x3cb   :  { %1737 = vsyncpa [#allocation4], 1 }
 0x3cc   :  { %1739 = vsyncpa [#allocation4 + $0x1], 1 }

</bundles_post_ra>
